<compile_context>
chip_gen: v5e
topology: v5e:2x2
jax: 0.10.0
libtpu: 0.0.40
codegen_flags: <defaults>
</compile_context>

<pallas_src>
from functools import partial

import jax
import jax.numpy as jnp
from jax.experimental import pallas as pl
from jax.experimental.pallas import tpu as pltpu

# ---------------------------------------------------------------------------
# Model hyper-parameters (mirror MLP.__init__)
# ---------------------------------------------------------------------------
HIDDEN_DIMS = (64, 128, 256, 256, 128, 64)   # fc1..fc6 output dims; fc7 -> num_classes


# ---------------------------------------------------------------------------
# Kernel: whole 7-layer MLP for one batch tile, all params resident in VMEM.
# ---------------------------------------------------------------------------
def _mlp_kernel(x_ref,
                w1, b1, w2, b2, w3, b3, w4, b4, w5, b5, w6, b6, w7, b7,
                out_ref):
    h = x_ref[...]                              # bf16 (tile, F)

    def dense_relu(h, w_ref, b_ref):
        # bf16 operands on the MXU, f32 accumulation; bias + ReLU in f32 on
        # the VPU; single cast back to bf16 as the next layer's input.
        y = jnp.dot(h, w_ref[...], preferred_element_type=jnp.float32) + b_ref[...]
        return jnp.maximum(y, 0.0).astype(jnp.bfloat16)

    h = dense_relu(h, w1, b1)                   # fc1 + ReLU  (dropout = identity)
    h = dense_relu(h, w2, b2)                   # fc2 + ReLU
    h = dense_relu(h, w3, b3)                   # fc3 + ReLU
    h = dense_relu(h, w4, b4)                   # fc4 + ReLU
    h = dense_relu(h, w5, b5)                   # fc5 + ReLU
    h = dense_relu(h, w6, b6)                   # fc6 + ReLU

    y = jnp.dot(h, w7[...], preferred_element_type=jnp.float32) + b7[...]
    out_ref[...] = y.astype(out_ref.dtype)      # fc7 logits, f32


# ---------------------------------------------------------------------------
# Tiling policy
# ---------------------------------------------------------------------------
def _choose_batch_tile(B):
    """Batch tile (multiple of 8 sublanes).

    * B <= 64       : whole batch, single grid step (latency path).
    * 64 < B <= 1024: split into >= 2 grid steps so both v7x TensorCores get
                      work on the 'parallel' batch axis.
    * B > 1024      : 512-row tiles to amortize the ~0.35 us per-step overhead
                      (largest f32 intermediate at tile=512 is ~0.5 MB).
    """
    b8 = pl.cdiv(B, 8) * 8
    if B <= 64:
        return b8
    if B <= 1024:
        return pl.cdiv(pl.cdiv(b8, 2), 8) * 8
    return 512


# ---------------------------------------------------------------------------
# One-time parameter prep (hoisted out of the hot path)
# ---------------------------------------------------------------------------
def prepare_params(params):
    """params: [(W_transposed [in,out] f32, b [1,out] f32), ...] ->
       (tuple of bf16 weights, tuple of f32 biases)."""
    w_list = tuple(jnp.asarray(w, jnp.bfloat16) for (w, _) in params)
    b_list = tuple(jnp.asarray(b, jnp.float32) for (_, b) in params)
    return w_list, b_list


# ---------------------------------------------------------------------------
# Jitted forward: pad -> pallas_call -> slice.
# ---------------------------------------------------------------------------
@partial(jax.jit, static_argnames=("batch_tile",))
def mlp_forward(x, w_list, b_list, batch_tile=None):
    """x: [B, input_size] float32. Returns [B, num_classes] float32 logits."""
    B, F = x.shape
    num_classes = w_list[-1].shape[1]

    tile = batch_tile if batch_tile is not None else _choose_batch_tile(B)
    Bp = pl.cdiv(B, tile) * tile

    x_bf16 = x.astype(jnp.bfloat16)
    x_p = x_bf16 if Bp == B else jnp.pad(x_bf16, ((0, Bp - B), (0, 0)))

    in_specs = [pl.BlockSpec((tile, F), lambda i: (i, 0))]
    operands = [x_p]
    for w, b in zip(w_list, b_list):
        # Constant block index -> weights/biases are DMA'd once and stay resident.
        in_specs.append(pl.BlockSpec(w.shape, lambda i: (0, 0)))
        in_specs.append(pl.BlockSpec(b.shape, lambda i: (0, 0)))
        operands.extend([w, b])

    flops = 2 * int(Bp) * sum(int(w.shape[0]) * int(w.shape[1]) for w in w_list)
    bytes_accessed = (int(x_p.size) * 2
                      + sum(int(w.size) * 2 for w in w_list)
                      + sum(int(b.size) * 4 for b in b_list)
                      + int(Bp) * int(num_classes) * 4)

    out = pl.pallas_call(
        _mlp_kernel,
        out_shape=jax.ShapeDtypeStruct((Bp, num_classes), jnp.float32),
        grid_spec=pltpu.PrefetchScalarGridSpec(
            num_scalar_prefetch=0,
            grid=(Bp // tile,),
            in_specs=in_specs,
            # Narrow output block: last dim == full array dim (legal), 16x less
            # HBM writeback than a 128-lane f32 slab and no wrapper slab-slice.
            out_specs=pl.BlockSpec((tile, num_classes), lambda i: (i, 0)),
        ),
        compiler_params=pltpu.CompilerParams(
            dimension_semantics=("parallel",)),
        cost_estimate=pl.CostEstimate(flops=flops, transcendentals=0,
                                      bytes_accessed=bytes_accessed),
    )(*operands)

    return out[:B]


# ---------------------------------------------------------------------------
# Param init + reference
# ---------------------------------------------------------------------------
def init_params(input_size, num_classes, key):
    """Deterministic synthetic init. Returns [(W_transposed [in,out], b [1,out]), ...]."""
    dims = (input_size,) + HIDDEN_DIMS + (num_classes,)
    params = []
    for li in range(len(dims) - 1):
        fan_in, fan_out = dims[li], dims[li + 1]
        key, kw, kb = jax.random.split(key, 3)
        bound = 1.0 / jnp.sqrt(fan_in)
        # PyTorch Linear stores weight as (out, in); we build it transposed (in, out).
        w_t = jax.random.uniform(kw, (fan_in, fan_out), jnp.float32, -bound, bound)
        b = jax.random.uniform(kb, (1, fan_out), jnp.float32, -bound, bound)
        params.append((w_t, b))
    return params


def mlp_reference(x, params):
    """Plain-JAX reference mirroring the kernel numerics (bf16 activations /
    weights on the matmul, f32 accumulation and bias/ReLU).  Dropout layers
    are identity in eval mode.  NOTE: this intentionally matches the kernel's
    bf16 path, not a pure-f32 PyTorch run."""
    h = x.astype(jnp.bfloat16)
    for li, (w, b) in enumerate(params):
        y = jnp.dot(h, w.astype(jnp.bfloat16),
                    preferred_element_type=jnp.float32) + b.astype(jnp.float32)
        if li < len(params) - 1:
            h = jnp.maximum(y, 0.0).astype(jnp.bfloat16)
        else:
            h = y
    return h


if __name__ == "__main__":
    INPUT_SIZE = 32
    NUM_CLASSES = 8

    key = jax.random.PRNGKey(0)
    params = init_params(INPUT_SIZE, NUM_CLASSES, key)
    w_list, b_list = prepare_params(params)       # one-time; outside hot path

    # --- small-batch case (single grid step) -------------------------------
    key, kx = jax.random.split(key)
    x_small = jax.random.normal(kx, (8, INPUT_SIZE), jnp.float32)
    out_small = jax.block_until_ready(mlp_forward(x_small, w_list, b_list))
    ref_small = mlp_reference(x_small, params)
    assert out_small.shape == (8, NUM_CLASSES)
    assert jnp.allclose(out_small, ref_small, atol=1e-2, rtol=1e-2), \
        "small-batch mismatch vs JAX reference"

    # --- multi-tile case (exercises batch tiling + padding, 2 grid steps) --
    key, kx2 = jax.random.split(key)
    x_big = jax.random.normal(kx2, (200, INPUT_SIZE), jnp.float32)
    out_big = jax.block_until_ready(mlp_forward(x_big, w_list, b_list))
    ref_big = mlp_reference(x_big, params)
    assert out_big.shape == (200, NUM_CLASSES)
    assert jnp.allclose(out_big, ref_big, atol=1e-2, rtol=1e-2), \
        "multi-tile mismatch vs JAX reference"

    print("KERNEL_OK")
</pallas_src>

<mosaic_0001>
module attributes {stable_mosaic.version = 11 : i64} {
  func.func @_mlp_kernel(%arg0: i32, %arg1: memref<8x32xbf16, #tpu.memory_space<vmem>>, %arg2: memref<32x64xbf16, #tpu.memory_space<vmem>>, %arg3: memref<1x64xf32, #tpu.memory_space<vmem>>, %arg4: memref<64x128xbf16, #tpu.memory_space<vmem>>, %arg5: memref<1x128xf32, #tpu.memory_space<vmem>>, %arg6: memref<128x256xbf16, #tpu.memory_space<vmem>>, %arg7: memref<1x256xf32, #tpu.memory_space<vmem>>, %arg8: memref<256x256xbf16, #tpu.memory_space<vmem>>, %arg9: memref<1x256xf32, #tpu.memory_space<vmem>>, %arg10: memref<256x128xbf16, #tpu.memory_space<vmem>>, %arg11: memref<1x128xf32, #tpu.memory_space<vmem>>, %arg12: memref<128x64xbf16, #tpu.memory_space<vmem>>, %arg13: memref<1x64xf32, #tpu.memory_space<vmem>>, %arg14: memref<64x8xbf16, #tpu.memory_space<vmem>>, %arg15: memref<1x8xf32, #tpu.memory_space<vmem>>, %arg16: memref<8x8xf32, #tpu.memory_space<vmem>>) attributes {dimension_semantics = [#tpu.dimension_semantics<parallel>], iteration_bounds = array<i64: 1>, scalar_prefetch = 0 : i64, scratch_operands = 0 : i64, tpu.core_type = #tpu.core_type<tc>, window_params = [{transform_indices = @transform_0, window_bounds = array<i64: 8, 32>}, {pipeline_mode = #tpu.pipeline_mode<synchronous>, transform_indices = @transform_1, window_bounds = array<i64: 32, 64>}, {pipeline_mode = #tpu.pipeline_mode<synchronous>, transform_indices = @transform_2, window_bounds = array<i64: 1, 64>}, {pipeline_mode = #tpu.pipeline_mode<synchronous>, transform_indices = @transform_3, window_bounds = array<i64: 64, 128>}, {pipeline_mode = #tpu.pipeline_mode<synchronous>, transform_indices = @transform_4, window_bounds = array<i64: 1, 128>}, {pipeline_mode = #tpu.pipeline_mode<synchronous>, transform_indices = @transform_5, window_bounds = array<i64: 128, 256>}, {pipeline_mode = #tpu.pipeline_mode<synchronous>, transform_indices = @transform_6, window_bounds = array<i64: 1, 256>}, {pipeline_mode = #tpu.pipeline_mode<synchronous>, transform_indices = @transform_7, window_bounds = array<i64: 256, 256>}, {pipeline_mode = #tpu.pipeline_mode<synchronous>, transform_indices = @transform_8, window_bounds = array<i64: 1, 256>}, {pipeline_mode = #tpu.pipeline_mode<synchronous>, transform_indices = @transform_9, window_bounds = array<i64: 256, 128>}, {pipeline_mode = #tpu.pipeline_mode<synchronous>, transform_indices = @transform_10, window_bounds = array<i64: 1, 128>}, {pipeline_mode = #tpu.pipeline_mode<synchronous>, transform_indices = @transform_11, window_bounds = array<i64: 128, 64>}, {pipeline_mode = #tpu.pipeline_mode<synchronous>, transform_indices = @transform_12, window_bounds = array<i64: 1, 64>}, {pipeline_mode = #tpu.pipeline_mode<synchronous>, transform_indices = @transform_13, window_bounds = array<i64: 64, 8>}, {pipeline_mode = #tpu.pipeline_mode<synchronous>, transform_indices = @transform_14, window_bounds = array<i64: 1, 8>}, {transform_indices = @transform_15, window_bounds = array<i64: 8, 8>}]} {
    %c0 = arith.constant 0 : index
    %c0_0 = arith.constant 0 : index
    %0 = vector.load %arg1[%c0, %c0_0] : memref<8x32xbf16, #tpu.memory_space<vmem>>, vector<8x32xbf16>
    %c0_1 = arith.constant 0 : index
    %c0_2 = arith.constant 0 : index
    %1 = vector.load %arg2[%c0_1, %c0_2] : memref<32x64xbf16, #tpu.memory_space<vmem>>, vector<32x64xbf16>
    %cst = arith.constant dense<0.000000e+00> : vector<8x64xf32>
    %2 = tpu.matmul %0, %1, %cst {dimension_numbers = #tpu.dot_dimension_numbers<[1], [0], [0], [1], [0, 0, 1, 1], [], []>} : vector<8x32xbf16>, vector<32x64xbf16>, vector<8x64xf32> -> vector<8x64xf32>
    %c0_3 = arith.constant 0 : index
    %c0_4 = arith.constant 0 : index
    %3 = vector.load %arg3[%c0_3, %c0_4] : memref<1x64xf32, #tpu.memory_space<vmem>>, vector<1x64xf32>
    %4 = vector.broadcast %3 : vector<1x64xf32> to vector<8x64xf32>
    %5 = arith.addf %2, %4 : vector<8x64xf32>
    %cst_5 = arith.constant 0.000000e+00 : f32
    %6 = vector.broadcast %cst_5 : f32 to vector<8x64xf32>
    %7 = arith.maximumf %5, %6 : vector<8x64xf32>
    %8 = arith.truncf %7 : vector<8x64xf32> to vector<8x64xbf16>
    %c0_6 = arith.constant 0 : index
    %c0_7 = arith.constant 0 : index
    %9 = vector.load %arg4[%c0_6, %c0_7] : memref<64x128xbf16, #tpu.memory_space<vmem>>, vector<64x128xbf16>
    %cst_8 = arith.constant dense<0.000000e+00> : vector<8x128xf32>
    %10 = tpu.matmul %8, %9, %cst_8 {dimension_numbers = #tpu.dot_dimension_numbers<[1], [0], [0], [1], [0, 0, 1, 1], [], []>} : vector<8x64xbf16>, vector<64x128xbf16>, vector<8x128xf32> -> vector<8x128xf32>
    %c0_9 = arith.constant 0 : index
    %c0_10 = arith.constant 0 : index
    %11 = vector.load %arg5[%c0_9, %c0_10] : memref<1x128xf32, #tpu.memory_space<vmem>>, vector<1x128xf32>
    %12 = vector.broadcast %11 : vector<1x128xf32> to vector<8x128xf32>
    %13 = arith.addf %10, %12 : vector<8x128xf32>
    %cst_11 = arith.constant 0.000000e+00 : f32
    %14 = vector.broadcast %cst_11 : f32 to vector<8x128xf32>
    %15 = arith.maximumf %13, %14 : vector<8x128xf32>
    %16 = arith.truncf %15 : vector<8x128xf32> to vector<8x128xbf16>
    %c0_12 = arith.constant 0 : index
    %c0_13 = arith.constant 0 : index
    %17 = vector.load %arg6[%c0_12, %c0_13] : memref<128x256xbf16, #tpu.memory_space<vmem>>, vector<128x256xbf16>
    %cst_14 = arith.constant dense<0.000000e+00> : vector<8x256xf32>
    %18 = tpu.matmul %16, %17, %cst_14 {dimension_numbers = #tpu.dot_dimension_numbers<[1], [0], [0], [1], [0, 0, 1, 1], [], []>} : vector<8x128xbf16>, vector<128x256xbf16>, vector<8x256xf32> -> vector<8x256xf32>
    %c0_15 = arith.constant 0 : index
    %c0_16 = arith.constant 0 : index
    %19 = vector.load %arg7[%c0_15, %c0_16] : memref<1x256xf32, #tpu.memory_space<vmem>>, vector<1x256xf32>
    %20 = vector.broadcast %19 : vector<1x256xf32> to vector<8x256xf32>
    %21 = arith.addf %18, %20 : vector<8x256xf32>
    %cst_17 = arith.constant 0.000000e+00 : f32
    %22 = vector.broadcast %cst_17 : f32 to vector<8x256xf32>
    %23 = arith.maximumf %21, %22 : vector<8x256xf32>
    %24 = arith.truncf %23 : vector<8x256xf32> to vector<8x256xbf16>
    %c0_18 = arith.constant 0 : index
    %c0_19 = arith.constant 0 : index
    %25 = vector.load %arg8[%c0_18, %c0_19] : memref<256x256xbf16, #tpu.memory_space<vmem>>, vector<256x256xbf16>
    %cst_20 = arith.constant dense<0.000000e+00> : vector<8x256xf32>
    %26 = tpu.matmul %24, %25, %cst_20 {dimension_numbers = #tpu.dot_dimension_numbers<[1], [0], [0], [1], [0, 0, 1, 1], [], []>} : vector<8x256xbf16>, vector<256x256xbf16>, vector<8x256xf32> -> vector<8x256xf32>
    %c0_21 = arith.constant 0 : index
    %c0_22 = arith.constant 0 : index
    %27 = vector.load %arg9[%c0_21, %c0_22] : memref<1x256xf32, #tpu.memory_space<vmem>>, vector<1x256xf32>
    %28 = vector.broadcast %27 : vector<1x256xf32> to vector<8x256xf32>
    %29 = arith.addf %26, %28 : vector<8x256xf32>
    %cst_23 = arith.constant 0.000000e+00 : f32
    %30 = vector.broadcast %cst_23 : f32 to vector<8x256xf32>
    %31 = arith.maximumf %29, %30 : vector<8x256xf32>
    %32 = arith.truncf %31 : vector<8x256xf32> to vector<8x256xbf16>
    %c0_24 = arith.constant 0 : index
    %c0_25 = arith.constant 0 : index
    %33 = vector.load %arg10[%c0_24, %c0_25] : memref<256x128xbf16, #tpu.memory_space<vmem>>, vector<256x128xbf16>
    %cst_26 = arith.constant dense<0.000000e+00> : vector<8x128xf32>
    %34 = tpu.matmul %32, %33, %cst_26 {dimension_numbers = #tpu.dot_dimension_numbers<[1], [0], [0], [1], [0, 0, 1, 1], [], []>} : vector<8x256xbf16>, vector<256x128xbf16>, vector<8x128xf32> -> vector<8x128xf32>
    %c0_27 = arith.constant 0 : index
    %c0_28 = arith.constant 0 : index
    %35 = vector.load %arg11[%c0_27, %c0_28] : memref<1x128xf32, #tpu.memory_space<vmem>>, vector<1x128xf32>
    %36 = vector.broadcast %35 : vector<1x128xf32> to vector<8x128xf32>
    %37 = arith.addf %34, %36 : vector<8x128xf32>
    %cst_29 = arith.constant 0.000000e+00 : f32
    %38 = vector.broadcast %cst_29 : f32 to vector<8x128xf32>
    %39 = arith.maximumf %37, %38 : vector<8x128xf32>
    %40 = arith.truncf %39 : vector<8x128xf32> to vector<8x128xbf16>
    %c0_30 = arith.constant 0 : index
    %c0_31 = arith.constant 0 : index
    %41 = vector.load %arg12[%c0_30, %c0_31] : memref<128x64xbf16, #tpu.memory_space<vmem>>, vector<128x64xbf16>
    %cst_32 = arith.constant dense<0.000000e+00> : vector<8x64xf32>
    %42 = tpu.matmul %40, %41, %cst_32 {dimension_numbers = #tpu.dot_dimension_numbers<[1], [0], [0], [1], [0, 0, 1, 1], [], []>} : vector<8x128xbf16>, vector<128x64xbf16>, vector<8x64xf32> -> vector<8x64xf32>
    %c0_33 = arith.constant 0 : index
    %c0_34 = arith.constant 0 : index
    %43 = vector.load %arg13[%c0_33, %c0_34] : memref<1x64xf32, #tpu.memory_space<vmem>>, vector<1x64xf32>
    %44 = vector.broadcast %43 : vector<1x64xf32> to vector<8x64xf32>
    %45 = arith.addf %42, %44 : vector<8x64xf32>
    %cst_35 = arith.constant 0.000000e+00 : f32
    %46 = vector.broadcast %cst_35 : f32 to vector<8x64xf32>
    %47 = arith.maximumf %45, %46 : vector<8x64xf32>
    %48 = arith.truncf %47 : vector<8x64xf32> to vector<8x64xbf16>
    %c0_36 = arith.constant 0 : index
    %c0_37 = arith.constant 0 : index
    %49 = vector.load %arg14[%c0_36, %c0_37] : memref<64x8xbf16, #tpu.memory_space<vmem>>, vector<64x8xbf16>
    %cst_38 = arith.constant dense<0.000000e+00> : vector<8x8xf32>
    %50 = tpu.matmul %48, %49, %cst_38 {dimension_numbers = #tpu.dot_dimension_numbers<[1], [0], [0], [1], [0, 0, 1, 1], [], []>} : vector<8x64xbf16>, vector<64x8xbf16>, vector<8x8xf32> -> vector<8x8xf32>
    %c0_39 = arith.constant 0 : index
    %c0_40 = arith.constant 0 : index
    %51 = vector.load %arg15[%c0_39, %c0_40] : memref<1x8xf32, #tpu.memory_space<vmem>>, vector<1x8xf32>
    %52 = vector.broadcast %51 : vector<1x8xf32> to vector<8x8xf32>
    %53 = arith.addf %50, %52 : vector<8x8xf32>
    %c0_41 = arith.constant 0 : index
    %c0_42 = arith.constant 0 : index
    %54 = vector.load %arg16[%c0_41, %c0_42] : memref<8x8xf32, #tpu.memory_space<vmem>>, vector<8x8xf32>
    tpu.vector_store %arg16[%c0_41, %c0_42], %53 {strides = array<i32>} : memref<8x8xf32, #tpu.memory_space<vmem>>, vector<8x8xf32>,
    return
  }
  func.func @transform_0(%arg0: i32) -> (i32, i32) {
    %c0_i32 = arith.constant 0 : i32
    %c0_i32_0 = arith.constant 0 : i32
    return %arg0, %c0_i32 : i32, i32
  }
  func.func @transform_1(%arg0: i32) -> (i32, i32) {
    %c0_i32 = arith.constant 0 : i32
    %c0_i32_0 = arith.constant 0 : i32
    %c0_i32_1 = arith.constant 0 : i32
    return %c0_i32, %c0_i32_0 : i32, i32
  }
  func.func @transform_2(%arg0: i32) -> (i32, i32) {
    %c0_i32 = arith.constant 0 : i32
    %c0_i32_0 = arith.constant 0 : i32
    %c0_i32_1 = arith.constant 0 : i32
    return %c0_i32, %c0_i32_0 : i32, i32
  }
  func.func @transform_3(%arg0: i32) -> (i32, i32) {
    %c0_i32 = arith.constant 0 : i32
    %c0_i32_0 = arith.constant 0 : i32
    %c0_i32_1 = arith.constant 0 : i32
    return %c0_i32, %c0_i32_0 : i32, i32
  }
  func.func @transform_4(%arg0: i32) -> (i32, i32) {
    %c0_i32 = arith.constant 0 : i32
    %c0_i32_0 = arith.constant 0 : i32
    %c0_i32_1 = arith.constant 0 : i32
    return %c0_i32, %c0_i32_0 : i32, i32
  }
  func.func @transform_5(%arg0: i32) -> (i32, i32) {
    %c0_i32 = arith.constant 0 : i32
    %c0_i32_0 = arith.constant 0 : i32
    %c0_i32_1 = arith.constant 0 : i32
    return %c0_i32, %c0_i32_0 : i32, i32
  }
  func.func @transform_6(%arg0: i32) -> (i32, i32) {
    %c0_i32 = arith.constant 0 : i32
    %c0_i32_0 = arith.constant 0 : i32
    %c0_i32_1 = arith.constant 0 : i32
    return %c0_i32, %c0_i32_0 : i32, i32
  }
  func.func @transform_7(%arg0: i32) -> (i32, i32) {
    %c0_i32 = arith.constant 0 : i32
    %c0_i32_0 = arith.constant 0 : i32
    %c0_i32_1 = arith.constant 0 : i32
    return %c0_i32, %c0_i32_0 : i32, i32
  }
  func.func @transform_8(%arg0: i32) -> (i32, i32) {
    %c0_i32 = arith.constant 0 : i32
    %c0_i32_0 = arith.constant 0 : i32
    %c0_i32_1 = arith.constant 0 : i32
    return %c0_i32, %c0_i32_0 : i32, i32
  }
  func.func @transform_9(%arg0: i32) -> (i32, i32) {
    %c0_i32 = arith.constant 0 : i32
    %c0_i32_0 = arith.constant 0 : i32
    %c0_i32_1 = arith.constant 0 : i32
    return %c0_i32, %c0_i32_0 : i32, i32
  }
  func.func @transform_10(%arg0: i32) -> (i32, i32) {
    %c0_i32 = arith.constant 0 : i32
    %c0_i32_0 = arith.constant 0 : i32
    %c0_i32_1 = arith.constant 0 : i32
    return %c0_i32, %c0_i32_0 : i32, i32
  }
  func.func @transform_11(%arg0: i32) -> (i32, i32) {
    %c0_i32 = arith.constant 0 : i32
    %c0_i32_0 = arith.constant 0 : i32
    %c0_i32_1 = arith.constant 0 : i32
    return %c0_i32, %c0_i32_0 : i32, i32
  }
  func.func @transform_12(%arg0: i32) -> (i32, i32) {
    %c0_i32 = arith.constant 0 : i32
    %c0_i32_0 = arith.constant 0 : i32
    %c0_i32_1 = arith.constant 0 : i32
    return %c0_i32, %c0_i32_0 : i32, i32
  }
  func.func @transform_13(%arg0: i32) -> (i32, i32) {
    %c0_i32 = arith.constant 0 : i32
    %c0_i32_0 = arith.constant 0 : i32
    %c0_i32_1 = arith.constant 0 : i32
    return %c0_i32, %c0_i32_0 : i32, i32
  }
  func.func @transform_14(%arg0: i32) -> (i32, i32) {
    %c0_i32 = arith.constant 0 : i32
    %c0_i32_0 = arith.constant 0 : i32
    %c0_i32_1 = arith.constant 0 : i32
    return %c0_i32, %c0_i32_0 : i32, i32
  }
  func.func @transform_15(%arg0: i32) -> (i32, i32) {
    %c0_i32 = arith.constant 0 : i32
    %c0_i32_0 = arith.constant 0 : i32
    return %arg0, %c0_i32 : i32, i32
  }
}

</mosaic_0001>

<bundles_post_ra>
// kernel: mlp_forward.1
= control target key start
LH: loop header
LB: loop body
LE: loop exit
PB: predicated region body
PF: predicated region fallthrough
CT: control target
= control target key end

     0   :  { %20 = vsyncpa [#allocation3], 0  ;;  %s1730_s0 = inlined_call_operand.vmem [shape: bf16[8,32], index: 0, kind: input, shape index: {}]   ;;  %s1731_s1 = inlined_call_operand.vmem [shape: bf16[32,64], index: 1, kind: input, shape index: {}]   ;;  %s1732_s2 = inlined_call_operand.vmem [shape: f32[1,64], index: 2, kind: input, shape index: {}]   ;;  %s1733_s3 = inlined_call_operand.hbm [shape: bf16[64,128], index: 3, kind: input, shape index: {}]   ;;  %s1734_s4 = inlined_call_operand.hbm [shape: f32[1,128], index: 4, kind: input, shape index: {}]   ;;  %s1735_s5 = inlined_call_operand.vmem [shape: bf16[128,256], index: 5, kind: input, shape index: {}]   ;;  %s1736_s6 = inlined_call_operand.vmem [shape: f32[1,256], index: 6, kind: input, shape index: {}]   ;;  %s1737_s7 = inlined_call_operand.hbm [shape: bf16[256,256], index: 7, kind: input, shape index: {}]   ;;  %s1738_s8 = inlined_call_operand.vmem [shape: f32[1,256], index: 8, kind: input, shape index: {}]   ;;  %s1739_s9 = inlined_call_operand.hbm [shape: bf16[256,128], index: 9, kind: input, shape index: {}]   ;;  %s1740_s10 = inlined_call_operand.vmem [shape: f32[1,128], index: 10, kind: input, shape index: {}]   ;;  %s1741_s11 = inlined_call_operand.vmem [shape: bf16[128,64], index: 11, kind: input, shape index: {}]   ;;  %s1742_s12 = inlined_call_operand.vmem [shape: f32[1,64], index: 12, kind: input, shape index: {}]   ;;  %s1743_s13 = inlined_call_operand.vmem [shape: bf16[64,8], index: 13, kind: input, shape index: {}]   ;;  %s1744_s14 = inlined_call_operand.vmem [shape: f32[1,8], index: 14, kind: input, shape index: {}]   ;;  %s1745_s15 = inlined_call_operand.hbm [shape: f32[8,8], index: 15, kind: output, shape index: {}]  }
   0x1   :  { %21 = vsyncpa [#allocation6], 0 }
   0x2   :  { %22 = vsyncpa [#allocation9], 0  ;;  %s48_s20 = sshll.u32 %s1734_s4, 4  ;;  %s49_s20 = int_to_ptr.hbm [resolvable:$true] %s48_s20 }
   0x3   :  { %23 = vsyncpa [#allocation4], 0  ;;  %s1465_s21 = smov [#allocation5]   ;;  %s34_s25 = sshll.u32 %s1733_s3, 4  ;;  %s35_s25 = int_to_ptr.hbm [resolvable:$true] %s34_s25 }
   0x4   :  { %s50_s22 = sshll.u32 %s1465_s21, 4  ;;  %s1466_s26 = smov [#allocation2]   ;;  %s51_s22 = int_to_ptr.vmem [resolvable:$true] %s50_s22 }
   0x5   :  { %53 = dma.hbm_to_vmem [thread:$0]  %s49_s20, 16, %s51_s22, [#allocation6]  }
   0x6   :  { %s36_s27 = sshll.u32 %s1466_s26, 4  ;;  %s1467_s28 = smov 64   ;;  %s37_s27 = int_to_ptr.vmem [resolvable:$true] %s36_s27 }
   0x7   :  { %s1468_s29 = smov 4   ;;  %s62_s4 = sshll.u32 %s1737_s7, 4  ;;  %s63_s4 = int_to_ptr.hbm [resolvable:$true] %s62_s4 }
   0x8   :  { %42 = dma.hbm_to_vmem [thread:$0]  %s35_s25, 512, %s37_s27, [#allocation3], %s1467_s28, %s1467_s28, %s1468_s29  }
   0x9   :  { %s1469_s17 = smov [#allocation7]   ;;  %s77_s3 = sshll.u32 %s1739_s9, 4  ;;  %s78_s3 = int_to_ptr.hbm [resolvable:$true] %s77_s3 }
   0xa   :  { %s64_s18 = sshll.u32 %s1469_s17, 4  ;;  %s1470_s20 = smov 128   ;;  %s65_s18 = int_to_ptr.vmem [resolvable:$true] %s64_s18 }
   0xb   :  { %s1471_s22 = smov 8   ;;  %s1472_s23 = smov [#allocation8]  }
   0xc   :  { %70 = dma.hbm_to_vmem [thread:$0]  %s63_s4, 4096, %s65_s18, [#allocation6], %s1470_s20, %s1470_s20, %s1471_s22  }
   0xd   :  { %s79_s24 = sshll.u32 %s1472_s23, 4  ;;  %s80_s24 = int_to_ptr.vmem [resolvable:$true] %s79_s24 }
   0xe   :  { %85 = dma.hbm_to_vmem [thread:$0]  %s78_s3, 2048, %s80_s24, [#allocation9], %s1467_s28, %s1467_s28, %s1468_s29  }
   0xf   :  { %1457 = dma.done.wait [#allocation3], 512  }
  0x10   :  { %1458 = vsyncadd [#allocation3], 4294966784 }
  0x11   :  { %1459 = dma.done.wait [#allocation6], 4112  }
  0x12   :  { %1460 = vsyncadd [#allocation6], 4294963184 }
  0x13   :  { %1461 = dma.done.wait [#allocation9], 2048  }
  0x14   :  { %1462 = vsyncadd [#allocation9], 4294965248  ;;  %v1242_v0 = vld [vmem:[%s1731_s1 + $0x8] sm:$0xff]  ;;  %v1246_v1 = vld [vmem:[#allocation2 + $0x18] sm:$0xff]  ;;  %vm134_vm0 = vcmask 261120   ;;  %vm189_vm1 = vcmask 523264  }
  0x15   :  { %144 = vmatpush.bf16.msra.mxu0 %v1242_v0  ;;  %v1241_v2 = vld [vmem:[%s1731_s1] sm:$0xff]  ;;  %197 = vmatpush.bf16.msra.mxu1 %v1246_v1  ;;  %v1245_v3 = vld [vmem:[#allocation2 + $0x10] sm:$0xff]  ;;  %v1244_v5 = vld [vmem:[#allocation2 + $0x8] sm:$0xff]  ;;  %s1473_s18 = smov [#allocation10]   ;;  %s898_s3 = sshll.u32 %s1745_s15, 4  ;;  %vm889_vm2 = vcmask 64512   ;;  %s899_s3 = int_to_ptr.hbm [resolvable:$true] %s898_s3 }
  0x16   :  { %v113_v4 = vld [vmem:[%s1730_s0] sm:$0xf]  ;;  %v994_v7 = vld [vmem:[%s1735_s5 + $0x70] sm:$0xf]  ;;  %v1262_v8 = vld [vmem:[%s1735_s5 + $0x74] sm:$0xf0] }
  0x17   :  { %v1243_v6 = vld [vmem:[#allocation2] sm:$0xff]  ;;  %v1261_v9 = vld [vmem:[%s1735_s5 + $0x74] sm:$0xf]  ;;  %v995_v10 = vor.u32 %v1262_v8, %v994_v7  ;;  %v996_v11 = vld [vmem:[%s1735_s5 + $0x78] sm:$0xf0]  ;;  %s896_s19 = sshll.u32 %s1473_s18, 4  ;;  %s897_s19 = int_to_ptr.vmem [resolvable:$true] %s896_s19 }
  0x18   :  { %v986_v12 = vld [vmem:[%s1735_s5 + $0x60] sm:$0xf]  ;;  %v1260_v13 = vld [vmem:[%s1735_s5 + $0x64] sm:$0xf0]  ;;  %v999_v14 = vor.u32 %v1261_v9, %v996_v11  ;;  %v1259_v15 = vld [vmem:[%s1735_s5 + $0x64] sm:$0xf] }
  0x19   :  { %145 = vmatpush.bf16.msra.mxu0 %v1241_v2  ;;  %198 = vmatpush.bf16.msra.mxu1 %v1245_v3  ;;  %v988_v16 = vld [vmem:[%s1735_s5 + $0x68] sm:$0xf0]  ;;  %v987_v17 = vor.u32 %v1260_v13, %v986_v12  ;;  %v978_v19 = vld [vmem:[%s1735_s5 + $0x50] sm:$0xf]  ;;  %v1258_v20 = vld [vmem:[%s1735_s5 + $0x54] sm:$0xf0] }
  0x1a   :  { %310 = vmatpush.bf16.msra.mxu2 %v995_v10  ;;  %323 = vmatpush.bf16.msra.mxu3 %v999_v14  ;;  %v991_v18 = vor.u32 %v1259_v15, %v988_v16  ;;  %v1257_v21 = vld [vmem:[%s1735_s5 + $0x54] sm:$0xf]  ;;  %v980_v22 = vld [vmem:[%s1735_s5 + $0x58] sm:$0xf0]  ;;  %v979_v23 = vor.u32 %v1258_v20, %v978_v19  ;;  %v970_v25 = vld [vmem:[%s1735_s5 + $0x40] sm:$0xf] }
  0x1b   :  { %v983_v24 = vor.u32 %v1257_v21, %v980_v22  ;;  %v1256_v26 = vld [vmem:[%s1735_s5 + $0x44] sm:$0xf0]  ;;  %v1255_v27 = vld [vmem:[%s1735_s5 + $0x44] sm:$0xf]  ;;  %v972_v28 = vld [vmem:[%s1735_s5 + $0x48] sm:$0xf0] }
  0x1c   :  { %918 = vmatmul.msk.bf16.vlgmr.msra.gmra.mxu0 %vm134_vm0, %v113_v4  ;;  %v971_v29 = vor.u32 %v1256_v26, %v970_v25  ;;  %v975_v30 = vor.u32 %v1255_v27, %v972_v28  ;;  %v962_v31 = vld [vmem:[%s1735_s5 + $0x30] sm:$0xf]  ;;  %v1254_v32 = vld [vmem:[%s1735_s5 + $0x34] sm:$0xf0]  ;;  %v1253_v33 = vld [vmem:[%s1735_s5 + $0x34] sm:$0xf] }
  0x1d   :  { %199 = vmatpush.bf16.msra.mxu1 %v1244_v5  ;;  %v964_v34 = vld [vmem:[%s1735_s5 + $0x38] sm:$0xf0]  ;;  %v963_v35 = vor.u32 %v1254_v32, %v962_v31  ;;  %v954_v37 = vld [vmem:[%s1735_s5 + $0x20] sm:$0xf]  ;;  %v1252_v38 = vld [vmem:[%s1735_s5 + $0x24] sm:$0xf0] }
  0x1e   :  { %311 = vmatpush.bf16.msra.mxu2 %v987_v17  ;;  %324 = vmatpush.bf16.msra.mxu3 %v991_v18  ;;  %v967_v36 = vor.u32 %v1253_v33, %v964_v34  ;;  %v1251_v39 = vld [vmem:[%s1735_s5 + $0x24] sm:$0xf]  ;;  %v956_v40 = vld [vmem:[%s1735_s5 + $0x28] sm:$0xf0]  ;;  %v955_v41 = vor.u32 %v1252_v38, %v954_v37  ;;  %v1332_v43 = vld [vmem:[%s1732_s2] ss:$0 sm:$0xff] }
  0x1f   :  { %v959_v42 = vor.u32 %v1251_v39, %v956_v40  ;;  %v946_v49 = vld [vmem:[%s1735_s5 + $0x10] sm:$0xf]  ;;  %v1250_v50 = vld [vmem:[%s1735_s5 + $0x14] sm:$0xf0]  ;;  %v1249_v51 = vld [vmem:[%s1735_s5 + $0x14] sm:$0xf] }
  0x20   :  { %v947_v52 = vor.u32 %v1250_v50, %v946_v49  ;;  %v948_v53 = vld [vmem:[%s1735_s5 + $0x18] sm:$0xf0]  ;;  %v938_v55 = vld [vmem:[%s1735_s5] sm:$0xf]  ;;  %v1248_v56 = vld [vmem:[%s1735_s5 + $0x4] sm:$0xf0] }
  0x21   :  { %200 = vmatpush.bf16.msra.mxu1 %v1243_v6  ;;  %v951_v54 = vor.u32 %v1249_v51, %v948_v53  ;;  %v1247_v57 = vld [vmem:[%s1735_s5 + $0x4] sm:$0xf]  ;;  %v939_v58 = vor.u32 %v1248_v56, %v938_v55  ;;  %v940_v59 = vld [vmem:[%s1735_s5 + $0x8] sm:$0xf0]  ;;  %v1058_v61 = vld [vmem:[#allocation7 + $0x70] sm:$0xf] }
  0x22   :  { %312 = vmatpush.bf16.msra.mxu2 %v979_v23  ;;  %325 = vmatpush.bf16.msra.mxu3 %v983_v24  ;;  %v943_v60 = vor.u32 %v1247_v57, %v940_v59  ;;  %v1278_v62 = vld [vmem:[#allocation7 + $0x74] sm:$0xf0]  ;;  %v1122_v63 = vld [vmem:[#allocation7 + $0xf0] sm:$0xf]  ;;  %v1277_v2 = vld [vmem:[#allocation7 + $0x74] sm:$0xf] }
  0x23   :  { %v1059_v0 = vor.u32 %v1278_v62, %v1058_v61  ;;  %v1294_v1 = vld [vmem:[#allocation7 + $0xf4] sm:$0xf0]  ;;  %v1060_v3 = vld [vmem:[#allocation7 + $0x78] sm:$0xf0]  ;;  %v1293_v6 = vld [vmem:[#allocation7 + $0xf4] sm:$0xf] }
  0x24   :  { %v1123_v4 = vor.u32 %v1294_v1, %v1122_v63  ;;  %v1063_v5 = vor.u32 %v1277_v2, %v1060_v3  ;;  %v1124_v7 = vld [vmem:[#allocation7 + $0xf8] sm:$0xf0]  ;;  %v1050_v8 = vld [vmem:[#allocation7 + $0x60] sm:$0xf]  ;;  %v1276_v10 = vld [vmem:[#allocation7 + $0x64] sm:$0xf0] }
  0x25   :  { %538 = vmatpush.bf16.msrb.mxu0 %v1059_v0  ;;  %v1127_v9 = vor.u32 %v1293_v6, %v1124_v7  ;;  %v1114_v11 = vld [vmem:[#allocation7 + $0xe0] sm:$0xf]  ;;  %v1292_v12 = vld [vmem:[#allocation7 + $0xe4] sm:$0xf0]  ;;  %v1051_v13 = vor.u32 %v1276_v10, %v1050_v8  ;;  %v1275_v15 = vld [vmem:[#allocation7 + $0x64] sm:$0xf] }
  0x26   :  { %313 = vmatpush.bf16.msra.mxu2 %v971_v29  ;;  %326 = vmatpush.bf16.msra.mxu3 %v975_v30  ;;  %v1115_v14 = vor.u32 %v1292_v12, %v1114_v11  ;;  %v1052_v16 = vld [vmem:[#allocation7 + $0x68] sm:$0xf0]  ;;  %v1291_v17 = vld [vmem:[#allocation7 + $0xe4] sm:$0xf]  ;;  %v1042_v20 = vld [vmem:[#allocation7 + $0x50] sm:$0xf] }
  0x27   :  { %551 = vmatpush.bf16.msrb.mxu1 %v1123_v4  ;;  %v1055_v18 = vor.u32 %v1275_v15, %v1052_v16  ;;  %v1116_v19 = vld [vmem:[#allocation7 + $0xe8] sm:$0xf0]  ;;  %v1274_v21 = vld [vmem:[#allocation7 + $0x54] sm:$0xf0]  ;;  %v1106_v23 = vld [vmem:[#allocation7 + $0xd0] sm:$0xf] }
  0x28   :  { %v1119_v22 = vor.u32 %v1291_v17, %v1116_v19  ;;  %v1290_v24 = vld [vmem:[#allocation7 + $0xd4] sm:$0xf0]  ;;  %v1273_v25 = vld [vmem:[#allocation7 + $0x54] sm:$0xf]  ;;  %v1043_v26 = vor.u32 %v1274_v21, %v1042_v20  ;;  %v1044_v27 = vld [vmem:[#allocation7 + $0x58] sm:$0xf0] }
  0x29   :  { %539 = vmatpush.bf16.msrb.mxu0 %v1051_v13  ;;  %v1289_v28 = vld [vmem:[#allocation7 + $0xd4] sm:$0xf]  ;;  %v1108_v29 = vld [vmem:[#allocation7 + $0xd8] sm:$0xf0]  ;;  %v1107_v30 = vor.u32 %v1290_v24, %v1106_v23  ;;  %v1047_v31 = vor.u32 %v1273_v25, %v1044_v27  ;;  %v1034_v32 = vld [vmem:[#allocation7 + $0x40] sm:$0xf] }
  0x2a   :  { %314 = vmatpush.bf16.msra.mxu2 %v963_v35  ;;  %327 = vmatpush.bf16.msra.mxu3 %v967_v36  ;;  %v1272_v33 = vld [vmem:[#allocation7 + $0x44] sm:$0xf0]  ;;  %v1098_v34 = vld [vmem:[#allocation7 + $0xc0] sm:$0xf]  ;;  %v1111_v35 = vor.u32 %v1289_v28, %v1108_v29  ;;  %v1271_v37 = vld [vmem:[#allocation7 + $0x44] sm:$0xf] }
  0x2b   :  { %552 = vmatpush.bf16.msrb.mxu1 %v1115_v14  ;;  %v1288_v36 = vld [vmem:[#allocation7 + $0xc4] sm:$0xf0]  ;;  %v1036_v38 = vld [vmem:[#allocation7 + $0x48] sm:$0xf0]  ;;  %v1287_v39 = vld [vmem:[#allocation7 + $0xc4] sm:$0xf] }
  0x2c   :  { %v1100_v40 = vld [vmem:[#allocation7 + $0xc8] sm:$0xf0]  ;;  %v1269_v49 = vld [vmem:[#allocation7 + $0x34] sm:$0xf]  ;;  %v1028_v50 = vld [vmem:[#allocation7 + $0x38] sm:$0xf0] }
  0x2d   :  { %540 = vmatpush.bf16.msrb.mxu0 %v1043_v26  ;;  %v1285_v51 = vld [vmem:[#allocation7 + $0xb4] sm:$0xf]  ;;  %v1031_v55 = vor.u32 %v1269_v49, %v1028_v50  ;;  %v1018_v56 = vld [vmem:[#allocation7 + $0x20] sm:$0xf]  ;;  %v1268_v57 = vld [vmem:[#allocation7 + $0x24] sm:$0xf0] }
  0x2e   :  { %315 = vmatpush.bf16.msra.mxu2 %v955_v41  ;;  %328 = vmatpush.bf16.msra.mxu3 %v959_v42  ;;  %v1035_v41 = vor.u32 %v1272_v33, %v1034_v32  ;;  %v1099_v42 = vor.u32 %v1288_v36, %v1098_v34  ;;  %v1267_v61 = vld [vmem:[#allocation7 + $0x24] sm:$0xf]  ;;  %v1020_v62 = vld [vmem:[#allocation7 + $0x28] sm:$0xf0]  ;;  %v1019_v1 = vor.u32 %v1268_v57, %v1018_v56  ;;  %v1333_v4 = vld [vmem:[#allocation5] ss:$0 sm:$0xff] }
  0x2f   :  { %553 = vmatpush.bf16.msrb.mxu1 %v1107_v30  ;;  %v1283_v63 = vld [vmem:[#allocation7 + $0xa4] sm:$0xf]  ;;  %v1084_v0 = vld [vmem:[#allocation7 + $0xa8] sm:$0xf0]  ;;  %v1023_v3 = vor.u32 %v1267_v61, %v1020_v62  ;;  %v1010_v11 = vld [vmem:[#allocation7 + $0x10] sm:$0xf] }
  0x30   :  { %v1266_v12 = vld [vmem:[#allocation7 + $0x14] sm:$0xf0]  ;;  %v1074_v13 = vld [vmem:[#allocation7 + $0x90] sm:$0xf]  ;;  %v1265_v16 = vld [vmem:[#allocation7 + $0x14] sm:$0xf] }
  0x31   :  { %541 = vmatpush.bf16.msrb.mxu0 %v1035_v41  ;;  %v1011_v14 = vor.u32 %v1266_v12, %v1010_v11  ;;  %v1282_v15 = vld [vmem:[#allocation7 + $0x94] sm:$0xf0]  ;;  %v1012_v17 = vld [vmem:[#allocation7 + $0x18] sm:$0xf0]  ;;  %v1281_v20 = vld [vmem:[#allocation7 + $0x94] sm:$0xf] }
  0x32   :  { %316 = vmatpush.bf16.msra.mxu2 %v947_v52  ;;  %329 = vmatpush.bf16.msra.mxu3 %v951_v54  ;;  %v1092_v52 = vld [vmem:[#allocation7 + $0xb8] sm:$0xf0]  ;;  %v1015_v19 = vor.u32 %v1265_v16, %v1012_v17  ;;  %v1002_v23 = vld [vmem:[#allocation7] sm:$0xf]  ;;  %v1264_v24 = vld [vmem:[#allocation7 + $0x4] sm:$0xf0] }
  0x33   :  { %554 = vmatpush.bf16.msrb.mxu1 %v1099_v42  ;;  %v1095_v59 = vor.u32 %v1285_v51, %v1092_v52  ;;  %v1076_v21 = vld [vmem:[#allocation7 + $0x98] sm:$0xf0]  ;;  %v1066_v25 = vld [vmem:[#allocation7 + $0x80] sm:$0xf]  ;;  %v1003_v26 = vor.u32 %v1264_v24, %v1002_v23  ;;  %v1280_v27 = vld [vmem:[#allocation7 + $0x84] sm:$0xf0] }
  0x34   :  { %v1263_v28 = vld [vmem:[#allocation7 + $0x4] sm:$0xf]  ;;  %v1004_v29 = vld [vmem:[#allocation7 + $0x8] sm:$0xf0]  ;;  %v1067_v30 = vor.u32 %v1280_v27, %v1066_v25  ;;  %v1310_v36 = vld [vmem:[#allocation8 + $0x78] sm:$0xff] }
  0x35   :  { %v1279_v32 = vld [vmem:[#allocation7 + $0x84] sm:$0xf]  ;;  %v1068_v33 = vld [vmem:[#allocation7 + $0x88] sm:$0xf0]  ;;  %v1322_v27 = vld [vmem:[%s1743_s13 + $0x18] sm:$0xff] }
  0x36   :  { %317 = vmatpush.bf16.msra.mxu2 %v939_v58  ;;  %330 = vmatpush.bf16.msra.mxu3 %v943_v60  ;;  %v1082_v58 = vld [vmem:[#allocation7 + $0xa0] sm:$0xf]  ;;  %v1284_v60 = vld [vmem:[#allocation7 + $0xa4] sm:$0xf0]  ;;  %v1071_v34 = vor.u32 %v1279_v32, %v1068_v33  ;;  %v1313_v24 = vld [vmem:[%s1741_s11 + $0x10] sm:$0xff] }
  0x37   :  { %v1083_v2 = vor.u32 %v1284_v60, %v1082_v58  ;;  %v1299_v41 = vld [vmem:[#allocation8 + $0x20] sm:$0xff]  ;;  %v1306_v58 = vld [vmem:[#allocation8 + $0x58] sm:$0xff]  ;;  %v1305_v60 = vld [vmem:[#allocation8 + $0x50] sm:$0xff] }
  0x38   :  { %v1307_v42 = vld [vmem:[#allocation8 + $0x60] sm:$0xff]  ;;  %v1304_v62 = vld [vmem:[#allocation8 + $0x48] sm:$0xff] }
  0x39   :  { %v1295_v61 = vld [vmem:[#allocation8] sm:$0xff] }
  0x3a   :  { %564 = vmatpush.bf16.msrb.mxu2 %v1063_v5  ;;  %577 = vmatpush.bf16.msrb.mxu3 %v1127_v9  ;;  %v1087_v5 = vor.u32 %v1283_v63, %v1084_v0  ;;  %v1303_v63 = vld [vmem:[#allocation8 + $0x40] sm:$0xff]  ;;  %v1318_v0 = vld [vmem:[%s1741_s11 + $0x38] sm:$0xff] }
  0x3b   :  { %v1312_v25 = vld [vmem:[%s1741_s11 + $0x8] sm:$0xff] }
  0x3e   :  { %565 = vmatpush.bf16.msrb.mxu2 %v1055_v18  ;;  %578 = vmatpush.bf16.msrb.mxu3 %v1119_v22  ;;  %v1075_v18 = vor.u32 %v1282_v15, %v1074_v13  ;;  %v1079_v22 = vor.u32 %v1281_v20, %v1076_v21 }
  0x42   :  { %566 = vmatpush.bf16.msrb.mxu2 %v1047_v31  ;;  %579 = vmatpush.bf16.msrb.mxu3 %v1111_v35  ;;  %v1007_v31 = vor.u32 %v1263_v28, %v1004_v29  ;;  %v1302_v35 = vld [vmem:[#allocation8 + $0x38] sm:$0xff]  ;;  %v1321_v28 = vld [vmem:[%s1743_s13 + $0x10] sm:$0xff]  ;;  %v1320_v29 = vld [vmem:[%s1743_s13 + $0x8] sm:$0xff] }
  0x99   :  { %v147_v44 = vpop.f32.mrf.mxu0 }
  0x9a   :  { %v148_v45 = vadd.f32 %v1332_v43, %v147_v44  ;;  %v1039_v43 = vor.u32 %v1271_v37, %v1036_v38  ;;  %v1026_v44 = vld [vmem:[#allocation7 + $0x30] sm:$0xf] }
  0x9b   :  { %v1301_v37 = vld [vmem:[#allocation8 + $0x30] sm:$0xff] }
  0x9c   :  { %v151_v46 = vmax.f32 %v148_v45, 0.0  ;;  %v1270_v45 = vld [vmem:[#allocation7 + $0x34] sm:$0xf0]  ;;  %567 = vmatpush.bf16.msrb.mxu2 %v1039_v43  ;;  %v1309_v38 = vld [vmem:[#allocation8 + $0x70] sm:$0xff] }
  0x9d   :  { %v1027_v53 = vor.u32 %v1270_v45, %v1026_v44  ;;  %v1298_v43 = vld [vmem:[#allocation8 + $0x18] sm:$0xff]  ;;  %v1297_v45 = vld [vmem:[#allocation8 + $0x10] sm:$0xff] }
  0x9e   :  { %v152_v47 = vpack.c.bf16 %v151_v46, %v151_v46  ;;  %v1090_v46 = vld [vmem:[#allocation7 + $0xb0] sm:$0xf]  ;;  %v224_v44 = vld [vmem:[%s1736_s6] sm:$0x3] }
  0x9f   :  { %542 = vmatpush.bf16.msrb.mxu0 %v1027_v53 }
  0xa0   :  { %935 = vmatmul.msk.bf16.vlgmr.msra.gmra.mxu1 %vm189_vm1, %v152_v47  ;;  %v1103_v47 = vor.u32 %v1287_v39, %v1100_v40  ;;  %568 = vmatpush.bf16.msrb.mxu2 %v1031_v55  ;;  %v1300_v39 = vld [vmem:[#allocation8 + $0x28] sm:$0xff] }
  0xa1   :  { %v149_v48 = vpop.f32.mrf.mxu0  ;;  %v1308_v40 = vld [vmem:[#allocation8 + $0x68] sm:$0xff] }
  0xa2   :  { %v1286_v48 = vld [vmem:[#allocation7 + $0xb4] sm:$0xf0]  ;;  %580 = vmatpush.bf16.msrb.mxu3 %v1103_v47  ;;  %v227_v47 = vperm.slane %v224_v44, 1 }
  0xa3   :  { %v1091_v54 = vor.u32 %v1286_v48, %v1090_v46  ;;  %543 = vmatpush.bf16.msrb.mxu0 %v1019_v1  ;;  %v226_v46 = vperm.slane %v224_v44, 0  ;;  %v1317_v1 = vld [vmem:[%s1741_s11 + $0x30] sm:$0xff] }
  0xa4   :  { %569 = vmatpush.bf16.msrb.mxu2 %v1023_v3  ;;  %v372_v3 = vld [vmem:[%s1738_s8] sm:$0x3] }
  0xa5   :  { %555 = vmatpush.bf16.msrb.mxu1 %v1091_v54  ;;  %v375_v11 = vperm.slane %v372_v3, 1 }
  0xa6   :  { %581 = vmatpush.bf16.msrb.mxu3 %v1095_v59  ;;  %v1296_v59 = vld [vmem:[#allocation8 + $0x8] sm:$0xff] }
  0xa7   :  { %544 = vmatpush.bf16.msrb.mxu0 %v1011_v14 }
  0xa8   :  { %570 = vmatpush.bf16.msrb.mxu2 %v1015_v19 }
  0xa9   :  { %556 = vmatpush.bf16.msrb.mxu1 %v1083_v2  ;;  %v1316_v2 = vld [vmem:[%s1741_s11 + $0x28] sm:$0xff] }
  0xaa   :  { %582 = vmatpush.bf16.msrb.mxu3 %v1087_v5  ;;  %v374_v5 = vperm.slane %v372_v3, 0 }
  0xab   :  { %545 = vmatpush.bf16.msrb.mxu0 %v1003_v26  ;;  %v1311_v26 = vld [vmem:[%s1741_s11] sm:$0xff] }
  0xac   :  { %571 = vmatpush.bf16.msrb.mxu2 %v1007_v31  ;;  %v1334_v31 = vld [vmem:[%s1740_s10] ss:$0 sm:$0xff] }
  0xad   :  { %557 = vmatpush.bf16.msrb.mxu1 %v1075_v18 }
  0xae   :  { %583 = vmatpush.bf16.msrb.mxu3 %v1079_v22 }
  0xaf   :  { %726 = vmatpush.bf16.msra.mxu0 %v1302_v35 }
  0xb1   :  { %558 = vmatpush.bf16.msrb.mxu1 %v1067_v30 }
  0xb2   :  { %584 = vmatpush.bf16.msrb.mxu3 %v1071_v34 }
  0xb3   :  { %727 = vmatpush.bf16.msra.mxu0 %v1301_v37 }
  0xb5   :  { %739 = vmatpush.bf16.msra.mxu1 %v1310_v36 }
  0xb7   :  { %728 = vmatpush.bf16.msra.mxu0 %v1300_v39  ;;  %v1319_v39 = vld [vmem:[%s1743_s13] sm:$0xff] }
  0xb9   :  { %740 = vmatpush.bf16.msra.mxu1 %v1309_v38 }
  0xbb   :  { %729 = vmatpush.bf16.msra.mxu0 %v1299_v41 }
  0xbd   :  { %741 = vmatpush.bf16.msra.mxu1 %v1308_v40  ;;  %v1335_v40 = vld [vmem:[%s1742_s12] ss:$0 sm:$0xff] }
  0xbf   :  { %730 = vmatpush.bf16.msra.mxu0 %v1298_v43 }
  0xc1   :  { %742 = vmatpush.bf16.msra.mxu1 %v1307_v42 }
  0xc3   :  { %731 = vmatpush.bf16.msra.mxu0 %v1297_v45 }
  0xc5   :  { %743 = vmatpush.bf16.msra.mxu1 %v1306_v58 }
  0xc7   :  { %732 = vmatpush.bf16.msra.mxu0 %v1296_v59 }
  0xc9   :  { %744 = vmatpush.bf16.msra.mxu1 %v1305_v60 }
  0xcb   :  { %733 = vmatpush.bf16.msra.mxu0 %v1295_v61 }
  0xcd   :  { %745 = vmatpush.bf16.msra.mxu1 %v1304_v62 }
  0xd1   :  { %746 = vmatpush.bf16.msra.mxu1 %v1303_v63 }
 0x11d   :  { %v202_v6 = vpop.f32.mrf.mxu1 }
 0x11e   :  { %v203_v7 = vadd.f32 %v1333_v4, %v202_v6  ;;  %v1315_v4 = vld [vmem:[%s1741_s11 + $0x20] sm:$0xff]  ;;  %v1314_v6 = vld [vmem:[%s1741_s11 + $0x18] sm:$0xff] }
 0x120   :  { %v206_v8 = vmax.f32 %v203_v7, 0.0 }
 0x122   :  { %v207_v9 = vpack.c.bf16 %v206_v8, %v206_v8 }
 0x124   :  { %318 = vmatmul.bf16.vlgmr.msra.gmra.mxu2 %v207_v9  ;;  %331 = vmatmul.bf16.vlgmr.msra.gmra.mxu3 %v207_v9 }
 0x125   :  { %v204_v10 = vpop.f32.mrf.mxu1  ;;  %822 = vmatpush.bf16.msra.mxu2 %v1318_v0  ;;  %880 = vmatpush.bf16.msra.mxu3 %v1322_v27 }
 0x129   :  { %823 = vmatpush.bf16.msra.mxu2 %v1317_v1  ;;  %881 = vmatpush.bf16.msra.mxu3 %v1321_v28 }
 0x12d   :  { %824 = vmatpush.bf16.msra.mxu2 %v1316_v2  ;;  %882 = vmatpush.bf16.msra.mxu3 %v1320_v29 }
 0x131   :  { %825 = vmatpush.bf16.msra.mxu2 %v1315_v4  ;;  %883 = vmatpush.bf16.msra.mxu3 %v1319_v39 }
 0x135   :  { %826 = vmatpush.bf16.msra.mxu2 %v1314_v6 }
 0x139   :  { %827 = vmatpush.bf16.msra.mxu2 %v1313_v24 }
 0x13d   :  { %828 = vmatpush.bf16.msra.mxu2 %v1312_v25 }
 0x141   :  { %829 = vmatpush.bf16.msra.mxu2 %v1311_v26 }
 0x1a7   :  { %v319_v48 = vpop.f32.mrf.mxu2  ;;  %v332_v49 = vpop.f32.mrf.mxu3 }
 0x1a8   :  { %v320_v50 = vadd.f32 %v319_v48, %v226_v46  ;;  %v333_v51 = vadd.f32 %v332_v49, %v227_v47  ;;  %v1336_v46 = vld [vmem:[%s1744_s14] ss:$0 sm:$0xff] }
 0x1aa   :  { %v336_v52 = vmax.f32 %v320_v50, 0.0  ;;  %v337_v53 = vmax.f32 %v333_v51, 0.0 }
 0x1ac   :  { %v338_v54 = vpack.c.bf16 %v336_v52, %v336_v52  ;;  %v339_v55 = vpack.c.bf16 %v337_v53, %v337_v53 }
 0x1ae   :  { %546 = vmatmul.bf16.vlgmr.msrb.gmra.mxu0 %v338_v54  ;;  %559 = vmatmul.bf16.vlgmr.msrb.gmra.mxu1 %v339_v55 }
 0x1af   :  { %572 = vmatmul.bf16.vlgmr.msrb.gmra.mxu2 %v338_v54  ;;  %585 = vmatmul.bf16.vlgmr.msrb.gmra.mxu3 %v339_v55  ;;  %v321_v56 = vpop.f32.mrf.mxu2  ;;  %v334_v57 = vpop.f32.mrf.mxu3 }
 0x22b   :  { %v547_v7 = vpop.f32.mrf.mxu0  ;;  %v560_v8 = vpop.f32.mrf.mxu1 }
 0x22c   :  { %v548_v9 = vadd.f32 %v547_v7, %v374_v5 }
 0x22e   :  { %v561_v10 = vadd.f32 %v560_v8, %v548_v9 }
 0x230   :  { %v590_v12 = vmax.f32 %v561_v10, 0.0 }
 0x232   :  { %v592_v13 = vpack.c.bf16 %v590_v12, %v590_v12  ;;  %v573_v14 = vpop.f32.mrf.mxu2  ;;  %v586_v15 = vpop.f32.mrf.mxu3 }
 0x233   :  { %v574_v16 = vadd.f32 %v573_v14, %v375_v11  ;;  %v549_v17 = vpop.f32.mrf.mxu0  ;;  %v562_v18 = vpop.f32.mrf.mxu1 }
 0x234   :  { %734 = vmatmul.bf16.vlgmr.msra.gmra.mxu0 %v592_v13 }
 0x235   :  { %v587_v19 = vadd.f32 %v586_v15, %v574_v16 }
 0x237   :  { %v591_v20 = vmax.f32 %v587_v19, 0.0 }
 0x239   :  { %v593_v21 = vpack.c.bf16 %v591_v20, %v591_v20 }
 0x23a   :  { %v575_v22 = vpop.f32.mrf.mxu2  ;;  %v588_v23 = vpop.f32.mrf.mxu3 }
 0x23b   :  { %747 = vmatmul.bf16.vlgmr.msra.gmra.mxu1 %v593_v21 }
 0x2b1   :  { %v735_v30 = vpop.f32.mrf.mxu0 }
 0x2b2   :  { %v736_v32 = vadd.f32 %v1334_v31, %v735_v30 }
 0x2b8   :  { %v748_v33 = vpop.f32.mrf.mxu1 }
 0x2b9   :  { %v749_v34 = vadd.f32 %v748_v33, %v736_v32  ;;  %v737_v35 = vpop.f32.mrf.mxu0 }
 0x2bb   :  { %v752_v36 = vmax.f32 %v749_v34, 0.0 }
 0x2bd   :  { %v753_v37 = vpack.c.bf16 %v752_v36, %v752_v36 }
 0x2bf   :  { %830 = vmatmul.bf16.vlgmr.msra.gmra.mxu2 %v753_v37 }
 0x2c0   :  { %v750_v38 = vpop.f32.mrf.mxu1 }
 0x342   :  { %v831_v41 = vpop.f32.mrf.mxu2 }
 0x343   :  { %v832_v42 = vadd.f32 %v1335_v40, %v831_v41 }
 0x345   :  { %v835_v43 = vmax.f32 %v832_v42, 0.0 }
 0x347   :  { %v836_v44 = vpack.c.bf16 %v835_v43, %v835_v43 }
 0x349   :  { %1240 = vmatmul.msk.bf16.vlgmr.msra.gmra.mxu3 %vm189_vm1, %v836_v44 }
 0x34a   :  { %v833_v45 = vpop.f32.mrf.mxu2 }
 0x3cc   :  { %v885_v47 = vpop.f32.mrf.mxu3 }
 0x3cd   :  { %v886_v48 = vadd.f32 %v1336_v46, %v885_v47 }
 0x3cf   :  { %890 = vst.msk [vmem:[#allocation10] sm:$0xff] %vm889_vm2, %v886_v48 }
 0x3d0   :  { %901 = dma.vmem_to_hbm [thread:$0]  %s897_s19, 128, %s899_s3, [#allocation4]  }
 0x3d4   :  { %v887_v49 = vpop.f32.mrf.mxu3 }
 0x3d5   :  { %1463 = dma.done.wait [#allocation4], 128  }
 0x3d6   :  { %1464 = vsyncadd [#allocation4], 4294967168 }
 0x3d7   :  { %906 = vsyncpa [#allocation3], 1 }
 0x3d8   :  { %907 = vsyncpa [#allocation6], 1 }
 0x3d9   :  { %908 = vsyncpa [#allocation9], 1 }
 0x3da   :  { %909 = vsyncpa [#allocation4], 1 }

</bundles_post_ra>
